<compile_context>
chip_gen: v5e
topology: v5e:2x2
jax: 0.10.0
libtpu: 0.0.40
codegen_flags: <defaults>
</compile_context>

<pallas_src>
import functools

import jax
import jax.numpy as jnp
from jax import lax
from jax.experimental import pallas as pl
from jax.experimental.pallas import tpu as pltpu


_A = -0.75  # PyTorch bicubic convolution coefficient


def _cubic_coeffs(t):
    """PyTorch get_cubic_upsample_coefficients (a = -0.75), elementwise."""
    def cc1(x):          # |x| <= 1
        return ((_A + 2.0) * x - (_A + 3.0)) * x * x + 1.0

    def cc2(x):          # 1 < |x| < 2
        return ((_A * x - 5.0 * _A) * x + 8.0 * _A) * x - 4.0 * _A

    return (cc2(t + 1.0), cc1(t), cc1(1.0 - t), cc2(2.0 - t))


def _bicubic_kernel(uv_ref, tex_ref, o_ref, acc_ref, *, h_in, w_in, tile_h):
    """One (batch, pixel-tile, H-chunk) step of bicubic grid_sample.

    uv_ref : (1, 2, TP)        raw uv in [0,1]; row 0 = x (width), row 1 = y
    tex_ref: (1, C_pad, TH, W) texture H-chunk (compute dtype, e.g. bf16)
    o_ref  : (1, C_pad, TP)    sampled output tile (channels x output pixels)
    acc_ref: (C_pad, TP) f32   accumulator across H-chunks
    """
    k = pl.program_id(2)

    @pl.when(k == 0)
    def _():
        acc_ref[...] = jnp.zeros_like(acc_ref)

    uv = uv_ref[0].astype(jnp.float32)                    # (2, TP)
    tp = uv.shape[-1]

    # uv*2-1, then grid_sampler_unnormalize (align_corners=False).
    gx = uv[0:1, :] * 2.0 - 1.0                           # x -> width
    gy = uv[1:2, :] * 2.0 - 1.0                           # y -> height
    ix = ((gx + 1.0) * w_in - 1.0) * 0.5
    iy = ((gy + 1.0) * h_in - 1.0) * 0.5
    ix0 = jnp.floor(ix)
    iy0 = jnp.floor(iy)
    wx = _cubic_coeffs(ix - ix0)                          # 4 x (1, TP)
    wy = _cubic_coeffs(iy - iy0)
    ix0 = ix0.astype(jnp.int32)
    iy0 = iy0.astype(jnp.int32)

    # Separable tap-weight matrices via iota compares (4 cheap passes each).
    # Out-of-range taps match no row -> weight 0 (zeros padding); zero-padded
    # texture rows/channels contribute 0 regardless of weight.
    x_iota = lax.broadcasted_iota(jnp.int32, (w_in, tp), 0)
    wxm = jnp.zeros((w_in, tp), jnp.float32)
    for i in range(4):
        px = ix0 + (i - 1)                                # (1, TP)
        wxm = wxm + jnp.where(x_iota == px, wx[i], 0.0)

    h0 = k * tile_h
    y_iota = lax.broadcasted_iota(jnp.int32, (tile_h, tp), 0) + h0
    wym = jnp.zeros((tile_h, tp), jnp.float32)
    for j in range(4):
        py = iy0 + (j - 1)                                # (1, TP)
        wym = wym + jnp.where(y_iota == py, wy[j], 0.0)

    tex = tex_ref[0]                                      # (C_pad, TH, W)
    c_pad = tex.shape[0]
    lhs = tex.reshape(c_pad * tile_h, w_in)               # last dim unchanged
    # Single MXU pass: bf16 operands, f32 accumulation.
    t2 = jnp.dot(lhs, wxm.astype(tex.dtype),
                 preferred_element_type=jnp.float32)      # (C_pad*TH, TP)
    t2 = t2.reshape(c_pad, tile_h, tp)
    acc_ref[...] += jnp.sum(t2 * wym[None, :, :], axis=1)  # reduce over H chunk

    @pl.when(k == pl.num_programs(2) - 1)
    def _():
        o_ref[0] = acc_ref[...].astype(o_ref.dtype)


def _round_up(x, m):
    return (x + m - 1) // m * m


def tex_sampler(uv, tex, *, tile_p=512, tile_h=None):
    """Pallas TexSampler.forward: bicubic grid_sample(tex, uv*2-1)."""
    B, two, Ho, Wo = uv.shape
    assert two == 2
    Bt, C, H, W = tex.shape
    assert Bt == B
    P = Ho * Wo
    out_dtype = tex.dtype

    # MXU operands go in as bf16 (f32 accumulation); halves tex HBM->VMEM DMA.
    compute_dtype = jnp.bfloat16 if tex.dtype == jnp.float32 else tex.dtype
    cd = jnp.dtype(compute_dtype).itemsize
    od = jnp.dtype(out_dtype).itemsize

    TP = min(tile_p, _round_up(P, 128))        # lane tile (multiple of 128)
    P_pad = _round_up(P, TP)
    C_pad = _round_up(C, 8)                    # sublane-dense output tiles

    # H-chunk: multiple of 8, sized so the tex block and the (C_pad*TH, TP)
    # matmul intermediate stay a few MiB (bounds VMEM, incl. v7x's 64 MiB).
    if tile_h is None:
        cap_tex = (2 * 1024 * 1024) // max(1, C_pad * W * cd)
        cap_mm = (4 * 1024 * 1024) // max(1, C_pad * TP * 4)
        tile_h = max(8, (min(cap_tex, cap_mm) // 8) * 8)
    TH = min(_round_up(H, 8), tile_h)
    H_pad = _round_up(H, TH)

    uv_f = uv.reshape(B, 2, P).astype(jnp.float32)
    if P_pad != P:
        uv_f = jnp.pad(uv_f, ((0, 0), (0, 0), (0, P_pad - P)))

    tex_c = tex.astype(compute_dtype)
    if C_pad != C or H_pad != H:
        tex_c = jnp.pad(tex_c,
                        ((0, 0), (0, C_pad - C), (0, H_pad - H), (0, 0)))

    # VMEM budget: double-buffered blocks + accumulator + in-kernel temps.
    tex_blk = C_pad * TH * W * cd
    uv_blk = 2 * TP * 4
    out_blk = C_pad * TP * od
    interm = (W * TP + TH * TP + C_pad * TH * TP + 6 * C_pad * TP) * 4
    vmem_need = 2 * (tex_blk + uv_blk + out_blk) + C_pad * TP * 4 + interm
    vmem_limit = int(min(64 * 1024 * 1024,
                         max(32 * 1024 * 1024, 2 * vmem_need)))

    kernel = functools.partial(_bicubic_kernel, h_in=H, w_in=W, tile_h=TH)
    out = pl.pallas_call(
        kernel,
        out_shape=jax.ShapeDtypeStruct((B, C_pad, P_pad), out_dtype),
        grid=(B, P_pad // TP, H_pad // TH),
        in_specs=[pl.BlockSpec((1, 2, TP), lambda b, t, k: (b, 0, t)),
                  pl.BlockSpec((1, C_pad, TH, W),
                               lambda b, t, k: (b, 0, k, 0))],
        out_specs=pl.BlockSpec((1, C_pad, TP), lambda b, t, k: (b, 0, t)),
        scratch_shapes=[pltpu.VMEM((C_pad, TP), jnp.float32)],
        compiler_params=pltpu.CompilerParams(
            dimension_semantics=("parallel", "parallel", "arbitrary"),
            vmem_limit_bytes=vmem_limit),
    )(uv_f, tex_c)
    # TODO(synk): textures whose width W is too large for a single VMEM block
    # would additionally need a W-chunk reduction axis; only H is streamed.
    return out[:, :C, :P].reshape(B, C, Ho, Wo)


def _ref_grid_sample_bicubic(uv, tex):
    """Pure-JAX reference (explicit gathers) of F.grid_sample(tex, uv*2-1,
    mode='bicubic', padding_mode='zeros', align_corners=False)."""
    B, C, H, W = tex.shape
    _, _, Ho, Wo = uv.shape
    g = uv.astype(jnp.float32) * 2.0 - 1.0
    gx, gy = g[:, 0], g[:, 1]                        # (B, Ho, Wo)
    ix = ((gx + 1.0) * W - 1.0) * 0.5
    iy = ((gy + 1.0) * H - 1.0) * 0.5
    ix0, iy0 = jnp.floor(ix), jnp.floor(iy)
    wx = _cubic_coeffs(ix - ix0)
    wy = _cubic_coeffs(iy - iy0)
    ix0, iy0 = ix0.astype(jnp.int32), iy0.astype(jnp.int32)
    texf = tex.reshape(B, C, H * W).astype(jnp.float32)
    out = jnp.zeros((B, C, Ho, Wo), jnp.float32)
    for j in range(4):
        py = iy0 + (j - 1)
        for i in range(4):
            px = ix0 + (i - 1)
            ok = (px >= 0) & (px < W) & (py >= 0) & (py < H)
            w = jnp.where(ok, wy[j] * wx[i], 0.0)                    # (B,Ho,Wo)
            idx = jnp.clip(py, 0, H - 1) * W + jnp.clip(px, 0, W - 1)
            idx_b = jnp.broadcast_to(idx.reshape(B, 1, Ho * Wo), (B, C, Ho * Wo))
            v = jnp.take_along_axis(texf, idx_b, axis=2).reshape(B, C, Ho, Wo)
            out = out + v * w[:, None, :, :]
    return out


if __name__ == "__main__":
    B, C, H, W = 2, 4, 16, 16        # texture
    Ho, Wo = 16, 16                  # uv / output resolution

    key = jax.random.PRNGKey(0)
    k_uv, k_tex = jax.random.split(key)
    uv = jax.random.uniform(k_uv, (B, 2, Ho, Wo), jnp.float32)   # uv in [0, 1]
    tex = jax.random.normal(k_tex, (B, C, H, W), jnp.float32)

    out = jax.block_until_ready(tex_sampler(uv, tex))
    assert out.shape == (B, C, Ho, Wo)
    assert bool(jnp.all(jnp.isfinite(out)))

    ref = _ref_grid_sample_bicubic(uv, tex)
    assert bool(jnp.allclose(out, ref, atol=2e-2, rtol=2e-2)), \
        float(jnp.max(jnp.abs(out - ref)))

    print("KERNEL_OK")
</pallas_src>

<mosaic_0001>
module attributes {stable_mosaic.version = 11 : i64} {
  func.func @_bicubic_kernel(%arg0: i32, %arg1: i32, %arg2: i32, %arg3: memref<1x2x256xf32, #tpu.memory_space<vmem>>, %arg4: memref<1x8x16x16xbf16, #tpu.memory_space<vmem>>, %arg5: memref<1x8x256xf32, #tpu.memory_space<vmem>>, %arg6: memref<8x256xf32, #tpu.memory_space<vmem>>) attributes {dimension_semantics = [#tpu.dimension_semantics<parallel>, #tpu.dimension_semantics<parallel>, #tpu.dimension_semantics<arbitrary>], iteration_bounds = array<i64: 2, 1, 1>, scalar_prefetch = 0 : i64, scratch_operands = 1 : i64, tpu.core_type = #tpu.core_type<tc>, window_params = [{transform_indices = @transform_0, window_bounds = array<i64: 1, 2, 256>}, {transform_indices = @transform_1, window_bounds = array<i64: 1, 8, 16, 16>}, {transform_indices = @transform_2, window_bounds = array<i64: 1, 8, 256>}]} {
    %c0_i32 = arith.constant 0 : i32
    %0 = arith.cmpi eq, %arg2, %c0_i32 : i32
    %1 = arith.extui %0 : i1 to i32
    %c0_i32_0 = arith.constant 0 : i32
    %2 = arith.cmpi ne, %1, %c0_i32_0 : i32
    scf.if %2 {
      %cst_75 = arith.constant 0.000000e+00 : f32
      %216 = vector.broadcast %cst_75 : f32 to vector<8x256xf32>
      %c0_76 = arith.constant 0 : index
      %c0_77 = arith.constant 0 : index
      %217 = vector.load %arg6[%c0_76, %c0_77] : memref<8x256xf32, #tpu.memory_space<vmem>>, vector<8x256xf32>
      tpu.vector_store %arg6[%c0_76, %c0_77], %216 {strides = array<i32>} : memref<8x256xf32, #tpu.memory_space<vmem>>, vector<8x256xf32>,
    } else {
    }
    %c0 = arith.constant 0 : index
    %c0_1 = arith.constant 0 : index
    %c0_2 = arith.constant 0 : index
    %3 = vector.load %arg3[%c0, %c0_1, %c0_2] : memref<1x2x256xf32, #tpu.memory_space<vmem>>, vector<1x2x256xf32>
    %4 = vector.shape_cast %3 : vector<1x2x256xf32> to vector<2x256xf32>
    %5 = vector.extract_strided_slice %4 {offsets = [0, 0], sizes = [1, 256], strides = [1, 1]} : vector<2x256xf32> to vector<1x256xf32>
    %cst = arith.constant 2.000000e+00 : f32
    %6 = vector.broadcast %cst : f32 to vector<1x256xf32>
    %7 = arith.mulf %5, %6 : vector<1x256xf32>
    %cst_3 = arith.constant 1.000000e+00 : f32
    %8 = vector.broadcast %cst_3 : f32 to vector<1x256xf32>
    %9 = arith.subf %7, %8 : vector<1x256xf32>
    %10 = vector.extract_strided_slice %4 {offsets = [1, 0], sizes = [1, 256], strides = [1, 1]} : vector<2x256xf32> to vector<1x256xf32>
    %cst_4 = arith.constant 2.000000e+00 : f32
    %11 = vector.broadcast %cst_4 : f32 to vector<1x256xf32>
    %12 = arith.mulf %10, %11 : vector<1x256xf32>
    %cst_5 = arith.constant 1.000000e+00 : f32
    %13 = vector.broadcast %cst_5 : f32 to vector<1x256xf32>
    %14 = arith.subf %12, %13 : vector<1x256xf32>
    %cst_6 = arith.constant 1.000000e+00 : f32
    %15 = vector.broadcast %cst_6 : f32 to vector<1x256xf32>
    %16 = arith.addf %9, %15 : vector<1x256xf32>
    %cst_7 = arith.constant 1.600000e+01 : f32
    %17 = vector.broadcast %cst_7 : f32 to vector<1x256xf32>
    %18 = arith.mulf %16, %17 : vector<1x256xf32>
    %cst_8 = arith.constant 1.000000e+00 : f32
    %19 = vector.broadcast %cst_8 : f32 to vector<1x256xf32>
    %20 = arith.subf %18, %19 : vector<1x256xf32>
    %cst_9 = arith.constant 5.000000e-01 : f32
    %21 = vector.broadcast %cst_9 : f32 to vector<1x256xf32>
    %22 = arith.mulf %20, %21 : vector<1x256xf32>
    %cst_10 = arith.constant 1.000000e+00 : f32
    %23 = vector.broadcast %cst_10 : f32 to vector<1x256xf32>
    %24 = arith.addf %14, %23 : vector<1x256xf32>
    %cst_11 = arith.constant 1.600000e+01 : f32
    %25 = vector.broadcast %cst_11 : f32 to vector<1x256xf32>
    %26 = arith.mulf %24, %25 : vector<1x256xf32>
    %cst_12 = arith.constant 1.000000e+00 : f32
    %27 = vector.broadcast %cst_12 : f32 to vector<1x256xf32>
    %28 = arith.subf %26, %27 : vector<1x256xf32>
    %cst_13 = arith.constant 5.000000e-01 : f32
    %29 = vector.broadcast %cst_13 : f32 to vector<1x256xf32>
    %30 = arith.mulf %28, %29 : vector<1x256xf32>
    %31 = math.floor %22 : vector<1x256xf32>
    %32 = math.floor %30 : vector<1x256xf32>
    %33 = arith.subf %22, %31 : vector<1x256xf32>
    %cst_14 = arith.constant 1.000000e+00 : f32
    %34 = vector.broadcast %cst_14 : f32 to vector<1x256xf32>
    %35 = arith.addf %33, %34 : vector<1x256xf32>
    %cst_15 = arith.constant -7.500000e-01 : f32
    %36 = vector.broadcast %cst_15 : f32 to vector<1x256xf32>
    %37 = arith.mulf %36, %35 : vector<1x256xf32>
    %cst_16 = arith.constant -3.750000e+00 : f32
    %38 = vector.broadcast %cst_16 : f32 to vector<1x256xf32>
    %39 = arith.subf %37, %38 : vector<1x256xf32>
    %40 = arith.mulf %39, %35 : vector<1x256xf32>
    %cst_17 = arith.constant -6.000000e+00 : f32
    %41 = vector.broadcast %cst_17 : f32 to vector<1x256xf32>
    %42 = arith.addf %40, %41 : vector<1x256xf32>
    %43 = arith.mulf %42, %35 : vector<1x256xf32>
    %cst_18 = arith.constant -3.000000e+00 : f32
    %44 = vector.broadcast %cst_18 : f32 to vector<1x256xf32>
    %45 = arith.subf %43, %44 : vector<1x256xf32>
    %cst_19 = arith.constant 1.250000e+00 : f32
    %46 = vector.broadcast %cst_19 : f32 to vector<1x256xf32>
    %47 = arith.mulf %46, %33 : vector<1x256xf32>
    %cst_20 = arith.constant 2.250000e+00 : f32
    %48 = vector.broadcast %cst_20 : f32 to vector<1x256xf32>
    %49 = arith.subf %47, %48 : vector<1x256xf32>
    %50 = arith.mulf %49, %33 : vector<1x256xf32>
    %51 = arith.mulf %50, %33 : vector<1x256xf32>
    %cst_21 = arith.constant 1.000000e+00 : f32
    %52 = vector.broadcast %cst_21 : f32 to vector<1x256xf32>
    %53 = arith.addf %51, %52 : vector<1x256xf32>
    %cst_22 = arith.constant 1.000000e+00 : f32
    %54 = vector.broadcast %cst_22 : f32 to vector<1x256xf32>
    %55 = arith.subf %54, %33 : vector<1x256xf32>
    %cst_23 = arith.constant 1.250000e+00 : f32
    %56 = vector.broadcast %cst_23 : f32 to vector<1x256xf32>
    %57 = arith.mulf %56, %55 : vector<1x256xf32>
    %cst_24 = arith.constant 2.250000e+00 : f32
    %58 = vector.broadcast %cst_24 : f32 to vector<1x256xf32>
    %59 = arith.subf %57, %58 : vector<1x256xf32>
    %60 = arith.mulf %59, %55 : vector<1x256xf32>
    %61 = arith.mulf %60, %55 : vector<1x256xf32>
    %cst_25 = arith.constant 1.000000e+00 : f32
    %62 = vector.broadcast %cst_25 : f32 to vector<1x256xf32>
    %63 = arith.addf %61, %62 : vector<1x256xf32>
    %cst_26 = arith.constant 2.000000e+00 : f32
    %64 = vector.broadcast %cst_26 : f32 to vector<1x256xf32>
    %65 = arith.subf %64, %33 : vector<1x256xf32>
    %cst_27 = arith.constant -7.500000e-01 : f32
    %66 = vector.broadcast %cst_27 : f32 to vector<1x256xf32>
    %67 = arith.mulf %66, %65 : vector<1x256xf32>
    %cst_28 = arith.constant -3.750000e+00 : f32
    %68 = vector.broadcast %cst_28 : f32 to vector<1x256xf32>
    %69 = arith.subf %67, %68 : vector<1x256xf32>
    %70 = arith.mulf %69, %65 : vector<1x256xf32>
    %cst_29 = arith.constant -6.000000e+00 : f32
    %71 = vector.broadcast %cst_29 : f32 to vector<1x256xf32>
    %72 = arith.addf %70, %71 : vector<1x256xf32>
    %73 = arith.mulf %72, %65 : vector<1x256xf32>
    %cst_30 = arith.constant -3.000000e+00 : f32
    %74 = vector.broadcast %cst_30 : f32 to vector<1x256xf32>
    %75 = arith.subf %73, %74 : vector<1x256xf32>
    %76 = arith.subf %30, %32 : vector<1x256xf32>
    %cst_31 = arith.constant 1.000000e+00 : f32
    %77 = vector.broadcast %cst_31 : f32 to vector<1x256xf32>
    %78 = arith.addf %76, %77 : vector<1x256xf32>
    %cst_32 = arith.constant -7.500000e-01 : f32
    %79 = vector.broadcast %cst_32 : f32 to vector<1x256xf32>
    %80 = arith.mulf %79, %78 : vector<1x256xf32>
    %cst_33 = arith.constant -3.750000e+00 : f32
    %81 = vector.broadcast %cst_33 : f32 to vector<1x256xf32>
    %82 = arith.subf %80, %81 : vector<1x256xf32>
    %83 = arith.mulf %82, %78 : vector<1x256xf32>
    %cst_34 = arith.constant -6.000000e+00 : f32
    %84 = vector.broadcast %cst_34 : f32 to vector<1x256xf32>
    %85 = arith.addf %83, %84 : vector<1x256xf32>
    %86 = arith.mulf %85, %78 : vector<1x256xf32>
    %cst_35 = arith.constant -3.000000e+00 : f32
    %87 = vector.broadcast %cst_35 : f32 to vector<1x256xf32>
    %88 = arith.subf %86, %87 : vector<1x256xf32>
    %cst_36 = arith.constant 1.250000e+00 : f32
    %89 = vector.broadcast %cst_36 : f32 to vector<1x256xf32>
    %90 = arith.mulf %89, %76 : vector<1x256xf32>
    %cst_37 = arith.constant 2.250000e+00 : f32
    %91 = vector.broadcast %cst_37 : f32 to vector<1x256xf32>
    %92 = arith.subf %90, %91 : vector<1x256xf32>
    %93 = arith.mulf %92, %76 : vector<1x256xf32>
    %94 = arith.mulf %93, %76 : vector<1x256xf32>
    %cst_38 = arith.constant 1.000000e+00 : f32
    %95 = vector.broadcast %cst_38 : f32 to vector<1x256xf32>
    %96 = arith.addf %94, %95 : vector<1x256xf32>
    %cst_39 = arith.constant 1.000000e+00 : f32
    %97 = vector.broadcast %cst_39 : f32 to vector<1x256xf32>
    %98 = arith.subf %97, %76 : vector<1x256xf32>
    %cst_40 = arith.constant 1.250000e+00 : f32
    %99 = vector.broadcast %cst_40 : f32 to vector<1x256xf32>
    %100 = arith.mulf %99, %98 : vector<1x256xf32>
    %cst_41 = arith.constant 2.250000e+00 : f32
    %101 = vector.broadcast %cst_41 : f32 to vector<1x256xf32>
    %102 = arith.subf %100, %101 : vector<1x256xf32>
    %103 = arith.mulf %102, %98 : vector<1x256xf32>
    %104 = arith.mulf %103, %98 : vector<1x256xf32>
    %cst_42 = arith.constant 1.000000e+00 : f32
    %105 = vector.broadcast %cst_42 : f32 to vector<1x256xf32>
    %106 = arith.addf %104, %105 : vector<1x256xf32>
    %cst_43 = arith.constant 2.000000e+00 : f32
    %107 = vector.broadcast %cst_43 : f32 to vector<1x256xf32>
    %108 = arith.subf %107, %76 : vector<1x256xf32>
    %cst_44 = arith.constant -7.500000e-01 : f32
    %109 = vector.broadcast %cst_44 : f32 to vector<1x256xf32>
    %110 = arith.mulf %109, %108 : vector<1x256xf32>
    %cst_45 = arith.constant -3.750000e+00 : f32
    %111 = vector.broadcast %cst_45 : f32 to vector<1x256xf32>
    %112 = arith.subf %110, %111 : vector<1x256xf32>
    %113 = arith.mulf %112, %108 : vector<1x256xf32>
    %cst_46 = arith.constant -6.000000e+00 : f32
    %114 = vector.broadcast %cst_46 : f32 to vector<1x256xf32>
    %115 = arith.addf %113, %114 : vector<1x256xf32>
    %116 = arith.mulf %115, %108 : vector<1x256xf32>
    %cst_47 = arith.constant -3.000000e+00 : f32
    %117 = vector.broadcast %cst_47 : f32 to vector<1x256xf32>
    %118 = arith.subf %116, %117 : vector<1x256xf32>
    %119 = arith.fptosi %31 : vector<1x256xf32> to vector<1x256xi32>
    %120 = arith.fptosi %32 : vector<1x256xf32> to vector<1x256xi32>
    %121 = tpu.iota {dimensions = array<i32: 0>} : vector<16x256xi32>
    %cst_48 = arith.constant 0.000000e+00 : f32
    %122 = vector.broadcast %cst_48 : f32 to vector<16x256xf32>
    %c-1_i32 = arith.constant -1 : i32
    %123 = vector.broadcast %c-1_i32 : i32 to vector<1x256xi32>
    %124 = arith.addi %119, %123 : vector<1x256xi32>
    %125 = vector.broadcast %124 : vector<1x256xi32> to vector<16x256xi32>
    %126 = arith.cmpi eq, %121, %125 : vector<16x256xi32>
    %cst_49 = arith.constant 0.000000e+00 : f32
    %127 = vector.shape_cast %45 : vector<1x256xf32> to vector<1x256xf32>
    %128 = vector.broadcast %127 : vector<1x256xf32> to vector<16x256xf32>
    %129 = vector.broadcast %cst_49 : f32 to vector<16x256xf32>
    %130 = arith.select %126, %128, %129 : vector<16x256xi1>, vector<16x256xf32>
    %131 = arith.addf %122, %130 : vector<16x256xf32>
    %c0_i32_50 = arith.constant 0 : i32
    %132 = vector.broadcast %c0_i32_50 : i32 to vector<1x256xi32>
    %133 = arith.addi %119, %132 : vector<1x256xi32>
    %134 = vector.broadcast %133 : vector<1x256xi32> to vector<16x256xi32>
    %135 = arith.cmpi eq, %121, %134 : vector<16x256xi32>
    %cst_51 = arith.constant 0.000000e+00 : f32
    %136 = vector.shape_cast %53 : vector<1x256xf32> to vector<1x256xf32>
    %137 = vector.broadcast %136 : vector<1x256xf32> to vector<16x256xf32>
    %138 = vector.broadcast %cst_51 : f32 to vector<16x256xf32>
    %139 = arith.select %135, %137, %138 : vector<16x256xi1>, vector<16x256xf32>
    %140 = arith.addf %131, %139 : vector<16x256xf32>
    %c1_i32 = arith.constant 1 : i32
    %141 = vector.broadcast %c1_i32 : i32 to vector<1x256xi32>
    %142 = arith.addi %119, %141 : vector<1x256xi32>
    %143 = vector.broadcast %142 : vector<1x256xi32> to vector<16x256xi32>
    %144 = arith.cmpi eq, %121, %143 : vector<16x256xi32>
    %cst_52 = arith.constant 0.000000e+00 : f32
    %145 = vector.shape_cast %63 : vector<1x256xf32> to vector<1x256xf32>
    %146 = vector.broadcast %145 : vector<1x256xf32> to vector<16x256xf32>
    %147 = vector.broadcast %cst_52 : f32 to vector<16x256xf32>
    %148 = arith.select %144, %146, %147 : vector<16x256xi1>, vector<16x256xf32>
    %149 = arith.addf %140, %148 : vector<16x256xf32>
    %c2_i32 = arith.constant 2 : i32
    %150 = vector.broadcast %c2_i32 : i32 to vector<1x256xi32>
    %151 = arith.addi %119, %150 : vector<1x256xi32>
    %152 = vector.broadcast %151 : vector<1x256xi32> to vector<16x256xi32>
    %153 = arith.cmpi eq, %121, %152 : vector<16x256xi32>
    %cst_53 = arith.constant 0.000000e+00 : f32
    %154 = vector.shape_cast %75 : vector<1x256xf32> to vector<1x256xf32>
    %155 = vector.broadcast %154 : vector<1x256xf32> to vector<16x256xf32>
    %156 = vector.broadcast %cst_53 : f32 to vector<16x256xf32>
    %157 = arith.select %153, %155, %156 : vector<16x256xi1>, vector<16x256xf32>
    %158 = arith.addf %149, %157 : vector<16x256xf32>
    %c16_i32 = arith.constant 16 : i32
    %159 = arith.muli %arg2, %c16_i32 : i32
    %160 = tpu.iota {dimensions = array<i32: 0>} : vector<16x256xi32>
    %161 = vector.broadcast %159 : i32 to vector<16x256xi32>
    %162 = arith.addi %160, %161 : vector<16x256xi32>
    %cst_54 = arith.constant 0.000000e+00 : f32
    %163 = vector.broadcast %cst_54 : f32 to vector<16x256xf32>
    %c-1_i32_55 = arith.constant -1 : i32
    %164 = vector.broadcast %c-1_i32_55 : i32 to vector<1x256xi32>
    %165 = arith.addi %120, %164 : vector<1x256xi32>
    %166 = vector.broadcast %165 : vector<1x256xi32> to vector<16x256xi32>
    %167 = arith.cmpi eq, %162, %166 : vector<16x256xi32>
    %cst_56 = arith.constant 0.000000e+00 : f32
    %168 = vector.shape_cast %88 : vector<1x256xf32> to vector<1x256xf32>
    %169 = vector.broadcast %168 : vector<1x256xf32> to vector<16x256xf32>
    %170 = vector.broadcast %cst_56 : f32 to vector<16x256xf32>
    %171 = arith.select %167, %169, %170 : vector<16x256xi1>, vector<16x256xf32>
    %172 = arith.addf %163, %171 : vector<16x256xf32>
    %c0_i32_57 = arith.constant 0 : i32
    %173 = vector.broadcast %c0_i32_57 : i32 to vector<1x256xi32>
    %174 = arith.addi %120, %173 : vector<1x256xi32>
    %175 = vector.broadcast %174 : vector<1x256xi32> to vector<16x256xi32>
    %176 = arith.cmpi eq, %162, %175 : vector<16x256xi32>
    %cst_58 = arith.constant 0.000000e+00 : f32
    %177 = vector.shape_cast %96 : vector<1x256xf32> to vector<1x256xf32>
    %178 = vector.broadcast %177 : vector<1x256xf32> to vector<16x256xf32>
    %179 = vector.broadcast %cst_58 : f32 to vector<16x256xf32>
    %180 = arith.select %176, %178, %179 : vector<16x256xi1>, vector<16x256xf32>
    %181 = arith.addf %172, %180 : vector<16x256xf32>
    %c1_i32_59 = arith.constant 1 : i32
    %182 = vector.broadcast %c1_i32_59 : i32 to vector<1x256xi32>
    %183 = arith.addi %120, %182 : vector<1x256xi32>
    %184 = vector.broadcast %183 : vector<1x256xi32> to vector<16x256xi32>
    %185 = arith.cmpi eq, %162, %184 : vector<16x256xi32>
    %cst_60 = arith.constant 0.000000e+00 : f32
    %186 = vector.shape_cast %106 : vector<1x256xf32> to vector<1x256xf32>
    %187 = vector.broadcast %186 : vector<1x256xf32> to vector<16x256xf32>
    %188 = vector.broadcast %cst_60 : f32 to vector<16x256xf32>
    %189 = arith.select %185, %187, %188 : vector<16x256xi1>, vector<16x256xf32>
    %190 = arith.addf %181, %189 : vector<16x256xf32>
    %c2_i32_61 = arith.constant 2 : i32
    %191 = vector.broadcast %c2_i32_61 : i32 to vector<1x256xi32>
    %192 = arith.addi %120, %191 : vector<1x256xi32>
    %193 = vector.broadcast %192 : vector<1x256xi32> to vector<16x256xi32>
    %194 = arith.cmpi eq, %162, %193 : vector<16x256xi32>
    %cst_62 = arith.constant 0.000000e+00 : f32
    %195 = vector.shape_cast %118 : vector<1x256xf32> to vector<1x256xf32>
    %196 = vector.broadcast %195 : vector<1x256xf32> to vector<16x256xf32>
    %197 = vector.broadcast %cst_62 : f32 to vector<16x256xf32>
    %198 = arith.select %194, %196, %197 : vector<16x256xi1>, vector<16x256xf32>
    %199 = arith.addf %190, %198 : vector<16x256xf32>
    %c0_63 = arith.constant 0 : index
    %c0_64 = arith.constant 0 : index
    %c0_65 = arith.constant 0 : index
    %c0_66 = arith.constant 0 : index
    %200 = vector.load %arg4[%c0_63, %c0_64, %c0_65, %c0_66] : memref<1x8x16x16xbf16, #tpu.memory_space<vmem>>, vector<1x8x16x16xbf16>
    %201 = vector.shape_cast %200 : vector<1x8x16x16xbf16> to vector<8x16x16xbf16>
    %202 = vector.shape_cast %201 : vector<8x16x16xbf16> to vector<128x16xbf16>
    %203 = arith.truncf %158 : vector<16x256xf32> to vector<16x256xbf16>
    %cst_67 = arith.constant dense<0.000000e+00> : vector<128x256xf32>
    %204 = tpu.matmul %202, %203, %cst_67 {dimension_numbers = #tpu.dot_dimension_numbers<[1], [0], [0], [1], [0, 0, 1, 1], [], []>} : vector<128x16xbf16>, vector<16x256xbf16>, vector<128x256xf32> -> vector<128x256xf32>
    %205 = vector.shape_cast %204 : vector<128x256xf32> to vector<8x16x256xf32>
    %c0_68 = arith.constant 0 : index
    %c0_69 = arith.constant 0 : index
    %206 = vector.load %arg6[%c0_68, %c0_69] : memref<8x256xf32, #tpu.memory_space<vmem>>, vector<8x256xf32>
    %207 = vector.shape_cast %199 : vector<16x256xf32> to vector<1x16x256xf32>
    %208 = vector.broadcast %207 : vector<1x16x256xf32> to vector<8x16x256xf32>
    %209 = arith.mulf %205, %208 : vector<8x16x256xf32>
    %cst_70 = arith.constant dense<0.000000e+00> : vector<8x256xf32>
    %210 = vector.multi_reduction <add>, %209, %cst_70 [1] : vector<8x16x256xf32> to vector<8x256xf32>
    %211 = arith.addf %206, %210 : vector<8x256xf32>
    %c0_71 = arith.constant 0 : index
    %c0_72 = arith.constant 0 : index
    %212 = vector.load %arg6[%c0_71, %c0_72] : memref<8x256xf32, #tpu.memory_space<vmem>>, vector<8x256xf32>
    tpu.vector_store %arg6[%c0_71, %c0_72], %211 {strides = array<i32>} : memref<8x256xf32, #tpu.memory_space<vmem>>, vector<8x256xf32>,
    %c0_i32_73 = arith.constant 0 : i32
    %213 = arith.cmpi eq, %arg2, %c0_i32_73 : i32
    %214 = arith.extui %213 : i1 to i32
    %c0_i32_74 = arith.constant 0 : i32
    %215 = arith.cmpi ne, %214, %c0_i32_74 : i32
    scf.if %215 {
      %c0_75 = arith.constant 0 : index
      %c0_76 = arith.constant 0 : index
      %216 = vector.load %arg6[%c0_75, %c0_76] : memref<8x256xf32, #tpu.memory_space<vmem>>, vector<8x256xf32>
      %c0_77 = arith.constant 0 : index
      %c0_78 = arith.constant 0 : index
      %c0_79 = arith.constant 0 : index
      %217 = vector.load %arg5[%c0_77, %c0_78, %c0_79] : memref<1x8x256xf32, #tpu.memory_space<vmem>>, vector<1x8x256xf32>
      %218 = vector.shape_cast %217 : vector<1x8x256xf32> to vector<8x256xf32>
      %219 = vector.shape_cast %216 : vector<8x256xf32> to vector<1x8x256xf32>
      tpu.vector_store %arg5[%c0_77, %c0_78, %c0_79], %219 {strides = array<i32>} : memref<1x8x256xf32, #tpu.memory_space<vmem>>, vector<1x8x256xf32>,
    } else {
    }
    return
  }
  func.func @transform_0(%arg0: i32, %arg1: i32, %arg2: i32) -> (i32, i32, i32) {
    %c0_i32 = arith.constant 0 : i32
    %c0_i32_0 = arith.constant 0 : i32
    return %arg0, %c0_i32, %arg1 : i32, i32, i32
  }
  func.func @transform_1(%arg0: i32, %arg1: i32, %arg2: i32) -> (i32, i32, i32, i32) {
    %c0_i32 = arith.constant 0 : i32
    %c0_i32_0 = arith.constant 0 : i32
    %c0_i32_1 = arith.constant 0 : i32
    return %arg0, %c0_i32, %arg2, %c0_i32_0 : i32, i32, i32, i32
  }
  func.func @transform_2(%arg0: i32, %arg1: i32, %arg2: i32) -> (i32, i32, i32) {
    %c0_i32 = arith.constant 0 : i32
    %c0_i32_0 = arith.constant 0 : i32
    return %arg0, %c0_i32, %arg1 : i32, i32, i32
  }
}

</mosaic_0001>

<bundles_post_ra>
// kernel: tpu_custom_call.1
= control target key start
LH: loop header
LB: loop body
LE: loop exit
PB: predicated region body
PF: predicated region fallthrough
CT: control target
= control target key end

     0   :  { %7 = vsyncpa [#allocation4], 0  ;;  %s1658_s0 = inlined_call_operand.hbm [shape: f32[2,2,256], index: 0, kind: input, shape index: {}]   ;;  %s1659_s1 = inlined_call_operand.hbm [shape: bf16[2,8,16,16], index: 1, kind: input, shape index: {}]   ;;  %s1660_s2 = inlined_call_operand.hbm [shape: f32[2,8,256], index: 2, kind: output, shape index: {}]  }
   0x1   :  { %9 = vsyncpa [#allocation4 + $0x1], 0 }
   0x2   :  { %10 = vsyncpa [#allocation7], 0 }
   0x3   :  { %12 = vsyncpa [#allocation7 + $0x1], 0 }
   0x4   :  { %13 = vsyncpa [#allocation5], 0 }
   0x5   :  { %15 = vsyncpa [#allocation5 + $0x1], 0  ;;  %s1301_s9 = smov 0   ;;  %s1303_s10 = smov 0  }
   0x6   :  { %s1305_s11 = smov 0   ;;  %s1307_s12 = smov 0  }
   0x7   :  { %s1309_s13 = smov 0   ;;  %s1311_s14 = smov 0  }
   0x8 LB: > { %s977_s15 = sadd.s32 4294967295, %s1282_s14   ;;  %s978_s16 = sadd.s32 4294967294, %s1282_s14   ;;  %s1282_s14 = sphi %s1311_s14, %s21_s14   ;;  %s1278_s13 = sphi %s1309_s13, %s1670_s13   ;;  %s1274_s12 = sphi %s1307_s12, %s1669_s12   ;;  %s1270_s11 = sphi %s1305_s11, %s1668_s11   ;;  %s1266_s10 = sphi %s1303_s10, %s1667_s10   ;;  %s1262_s9 = sphi %s1301_s9, %s1666_s9  }
   0x9   : > { %s40_s17 = sadd.s32 1, %s1278_s13  ;;  %s49_s18 = sadd.s32 1, %s1270_s11 }
   0xa   : > { %p42_p0 = scmp.ge.s32.totalorder %s40_s17, 2  ;;  %p56_p1 = scmp.ne.s32.totalorder %s1270_s11, %s1266_s10 }
   0xb   : > { %p57_p2 = scmp.eq.s32.totalorder %s1282_s14, 0  ;;  %p62_p3 = scmp.ne.s32.totalorder %s1266_s10, %s1262_s9 }
   0xc   : > { %s1672_s17 = smov (%p42_p0, %s40_s17), 0  ;;  %p63_p5 = scmp.eq.s32.totalorder %s977_s15, 0 }
   0xd   : > { %p1342_p4 = por %p57_p2, %p56_p1  ;;  %s44_s20 = ssub.s32 %s1278_s13, %s1672_s17 }
   0xe   : > { %p116_p6 = scmp.eq.s32.totalorder %s977_s15, 1  ;;  %p47_p7 = scmp.eq.s32.totalorder %s44_s20, 0 }
   0xf   : > { %p1348_p8 = por %p63_p5, %p62_p3  ;;  %p122_p10 = scmp.eq.s32.totalorder %s978_s16, 1 }
  0x10   : > { %p1352_p9 = por %p116_p6, %p56_p1  ;;  %p980_p12 = scmp.ge.s32.totalorder %s1282_s14, 2 }
  0x11   : > { %s1357_s23 = scalar_select %p47_p7, %s1270_s11, %s49_s18  }
  0x12   : > { %p1359_p11 = por %p122_p10, %p62_p3  ;;  %p1084_p13 = scmp.lt.s32.totalorder %s1282_s14, 2 }
  0x13   : > { %s1366_s25 = sand.u32 1, %s1270_s11   ;;  %s1052_s27 = sshll.u32 %s1278_s13, 2 }
  0x14   : > { %s981_s26 = sshll.u32 %s1366_s25, 2  ;;  %s153_s30 = scalar_lea.hbm %s1658_s0, %s1052_s27 }
  0x15   : > { %s146_s3 = scalar_lea.vmem [#allocation3], %s981_s26  ;;  %s155_s5 = sshll.u32 %s153_s30, 4  ;;  %s156_s5 = int_to_ptr.hbm [resolvable:$true] %s155_s5 }
  0x16   : > { %s157_s4 = sshll.u32 %s146_s3, 4  ;;  %p1375_p0 = pnand %p1084_p13, %p1342_p4  ;;  %s158_s4 = int_to_ptr.vmem [resolvable:$true] %s157_s4 }
  0x17   : > { %p987_p1 = scmp.ge.s32.totalorder %s1282_s14, 1  ;;  %p186_p2 = scmp.lt.s32.totalorder %s1282_s14, 3 }
  0x18   : > { %s143_s7 = scalar_lea.sflag [#allocation4], %s1366_s25  ;;  %s984_s8 = sshll.u32 %s1366_s25, 6 }
  0x19   : > { %1076 = dma.hbm_to_vmem [thread:$0]  (!%p1375_p0), %s156_s5, 64, %s158_s4, %s143_s7  }
  0x1a   : > { %p187_p3 = pnand %p987_p1, %p186_p2  ;;  %s1053_s15 = sshll.u32 %s1278_s13, 6 }
  0x1b   : > { %s175_s20 = scalar_lea.hbm %s1659_s1, %s1053_s15  ;;  %s168_s26 = scalar_lea.vmem [#allocation6], %s984_s8 }
  0x1c   : > { %s178_s19 = sshll.u32 %s168_s26, 4  ;;  %s176_s27 = sshll.u32 %s175_s20, 4  ;;  %s179_s19 = int_to_ptr.vmem [resolvable:$true] %s178_s19  ;;  %s177_s27 = int_to_ptr.hbm [resolvable:$true] %s176_s27 }
  0x1d   : > { %s165_s28 = scalar_lea.sflag [#allocation7], %s1366_s25  ;;  %s1284_s29 = smov 64  }
  0x1e   : > { %s1285_s30 = smov 4   ;;  %190 = sbr.rel (%p187_p3) target bundleno = 318 (0x13e), region = 28 }
  0x1f   : > { %1079 = dma.hbm_to_vmem [thread:$0]  (!%p1375_p0), %s177_s27, 1024, %s179_s19, %s165_s28, %s1284_s29, %s1284_s29, %s1285_s30  }
  0x20   : > { %s1393_s3 = sand.u32 (!%p187_p3), 1, %s1266_s10  }
  0x21   : > { %s988_s4 = sshll.u32 (!%p187_p3), %s1393_s3, 2  ;;  %s193_s5 = scalar_lea.sflag (!%p187_p3), [#allocation4], %s1393_s3 }
  0x22   : > { %s196_s7 = scalar_lea.vmem (!%p187_p3), [#allocation3], %s988_s4 }
  0x23   : > { %1249 = dma.done.wait (%p1348_p8), %s193_s5, 64  }
  0x24   : > { %1251 = vsyncadd (%p1348_p8), %s193_s5, 4294967232  ;;  %s989_s25 = sshll.u32 %s1393_s3, 6  ;;  %s203_s6 = scalar_lea.sflag [#allocation7], %s1393_s3 }
  0x25   : > { %s1403_s8 = scalar_lea.vmem [#allocation6], %s989_s25 }
  0x26   : > { %1253 = dma.done.wait (%p1348_p8), %s203_s6, 1024  }
  0x27   : > { %1255 = vsyncadd (%p1348_p8), %s203_s6, 4294966272  ;;  %v243_v0 = vld [vmem:[%s196_s7] sm:$0xf]  ;;  %v278_v5 = vlaneseq  ;;  %s990_s21 = sshll.u32 %s1393_s3, 4  ;;  %s1062_s16 = sshll.u32 %s1274_s12, 4 }
  0x28   : > { %v244_v1 = vmul.f32 2.0, %v243_v0  ;;  %s232_s15 = scalar_lea.vmem [#allocation8], %s990_s21  ;;  %s859_s26 = scalar_lea.hbm %s1660_s2, %s1062_s16 }
  0x29   : > { %v1409_v8 = vshrl.u32 %v278_v5, 7  ;;  %s861_s12 = sshll.u32 %s232_s15, 4  ;;  %s863_s19 = sshll.u32 %s859_s26, 4  ;;  %s862_s12 = int_to_ptr.vmem [resolvable:$true] %s861_s12  ;;  %s864_s19 = int_to_ptr.hbm [resolvable:$true] %s863_s19 }
  0x2a   : > { %v991_v2 = vadd.f32 -1.0, %v244_v1  ;;  %s846_s27 = scalar_lea.sflag [#allocation5], %s1393_s3  ;;  %s1210_s28 = sshra.s32 %s864_s19, 4  ;;  %s1211_s28 = int_to_ptr.hbm [resolvable:$true] %s1210_s28 }
  0x2b   : > { %v1414_v12 = vadd.s32 8, %v1409_v8  ;;  %s1212_s29 = scalar_lea.hbm %s1211_s28, 16  ;;  %s1216_s5 = scalar_lea.hbm %s1660_s2, 32 }
  0x2c   : > { %v246_v3 = vadd.f32 1.0, %v991_v2  ;;  %p1213_p4 = scmp.ne.s32.totalorder %s1211_s28, %s1212_s29  ;;  %p1217_p7 = scmp.lt.s32.totalorder %s1211_s28, %s1660_s2 }
  0x2d   : > { %p1218_p8 = scmp.lt.s32.totalorder %s1216_s5, %s1212_s29 }
  0x2e   : > { %v247_v4 = vmul.f32 16.0, %v246_v3  ;;  %p1214_p5 = pnand %p1213_p4, %p1352_p9 }
  0x2f   : > { %p1219_p10 = por %p1218_p8, %p1217_p7 }
  0x30   : > { %v992_v6 = vadd.f32 -1.0, %v247_v4  ;;  %p1215_p6 = pneg %p1214_p5 }
  0x32   : > { %v249_v7 = vmul.f32 0.5, %v992_v6  ;;  %p1220_p13 = pnand %p1219_p10, %p1215_p6 }
  0x34   : > { %v250_v9 = vfloor.f32 %v249_v7 }
  0x36   : > { %v251_v10 = vsub.f32 %v249_v7, %v250_v9  ;;  %v1411_v11 = vcvt.f32.s32 %v250_v9 }
  0x38   : > { %v252_v13 = vadd.f32 1.0, %v251_v10  ;;  %v259_v14 = vmul.f32 1.25, %v251_v10  ;;  %v264_v15 = vsub.f32 1.0, %v251_v10  ;;  %v270_v16 = vsub.f32 2.0, %v251_v10 }
  0x39   : > { %v1417_v17 = vadd.s32 4294967295, %v1411_v11  ;;  %v305_v18 = vperm.slane %v1411_v11, 0  ;;  %v1421_v19 = vadd.s32 1, %v1411_v11  ;;  %v1424_v20 = vadd.s32 2, %v1411_v11 }
  0x3a   : > { %v253_v21 = vmul.f32 -0.75, %v252_v13  ;;  %v995_v22 = vadd.f32 -2.25, %v259_v14  ;;  %v265_v23 = vmul.f32 1.25, %v264_v15  ;;  %v271_v24 = vmul.f32 -0.75, %v270_v16 }
  0x3b   : > { %v282_v25 = vperm.slane %v1417_v17, 0  ;;  %v307_v26 = vperm.slane %v305_v18, 0  ;;  %v329_v27 = vperm.slane %v1421_v19, 0  ;;  %v353_v28 = vperm.slane %v1424_v20, 0 }
  0x3c   : > { %v993_v29 = vadd.f32 3.75, %v253_v21  ;;  %v261_v30 = vmul.f32 %v995_v22, %v251_v10  ;;  %v996_v31 = vadd.f32 -2.25, %v265_v23  ;;  %v997_v32 = vadd.f32 3.75, %v271_v24 }
  0x3d   : > { %v284_v33 = vperm.slane %v282_v25, 0  ;;  %vm309_vm0 = vcmp.eq.s32.totalorder %v1409_v8, %v307_v26  ;;  %vm311_vm1 = vcmp.eq.s32.totalorder %v1414_v12, %v307_v26  ;;  %v331_v34 = vperm.slane %v329_v27, 0 }
  0x3e   : > { %v255_v35 = vmul.f32 %v993_v29, %v252_v13  ;;  %v262_v36 = vmul.f32 %v261_v30, %v251_v10  ;;  %v267_v37 = vmul.f32 %v996_v31, %v264_v15  ;;  %v273_v38 = vmul.f32 %v997_v32, %v270_v16 }
  0x3f   : > { %vm286_vm2 = vcmp.eq.s32.totalorder %v1409_v8, %v284_v33  ;;  %vm288_vm3 = vcmp.eq.s32.totalorder %v1414_v12, %v284_v33  ;;  %vm333_vm4 = vcmp.eq.s32.totalorder %v1409_v8, %v331_v34  ;;  %vm335_vm5 = vcmp.eq.s32.totalorder %v1414_v12, %v331_v34 }
  0x40   : > { %v256_v39 = vadd.f32 -6.0, %v255_v35  ;;  %v1435_v40 = vadd.f32 1.0, %v262_v36  ;;  %v268_v41 = vmul.f32 %v267_v37, %v264_v15  ;;  %v274_v42 = vadd.f32 -6.0, %v273_v38 }
  0x41   : > { %v355_v43 = vperm.slane %v353_v28, 0  ;;  %v380_v44 = vperm.slane %v1417_v17, 1  ;;  %v381_v45 = vperm.slane %v1417_v17, 3  ;;  %v402_v46 = vperm.slane %v1411_v11, 1 }
  0x42   : > { %v257_v47 = vmul.f32 %v256_v39, %v252_v13  ;;  %v1440_v48 = vadd.f32 1.0, %v268_v41  ;;  %v275_v49 = vmul.f32 %v274_v42, %v270_v16  ;;  %v314_v50 = vperm.slane %v1435_v40, 0 }
  0x43   : > { %vm357_vm6 = vcmp.eq.s32.totalorder %v1409_v8, %v355_v43  ;;  %vm359_vm7 = vcmp.eq.s32.totalorder %v1414_v12, %v355_v43  ;;  %v382_v51 = vperm.slane %v380_v44, 1  ;;  %v383_v52 = vperm.slane %v381_v45, 1 }
  0x44   : > { %v1445_v53 = vadd.f32 3.0, %v257_v47  ;;  %v1447_v54 = vadd.f32 3.0, %v275_v49  ;;  %v318_v55 = vperm.slane %v314_v50, 0  ;;  %v338_v56 = vperm.slane %v1440_v48, 0 }
  0x45   : > { %vm384_vm8 = vcmp.eq.s32.totalorder %v1409_v8, %v382_v51  ;;  %vm385_vm9 = vcmp.eq.s32.totalorder %v1409_v8, %v383_v52  ;;  %vm386_vm10 = vcmp.eq.s32.totalorder %v1414_v12, %v382_v51  ;;  %vm387_vm11 = vcmp.eq.s32.totalorder %v1414_v12, %v383_v52 }
  0x46   : > { %v291_v57 = vperm.slane %v1445_v53, 0  ;;  %v320_v58 = vsel %vm309_vm0, %v318_v55, 0.0  ;;  %v322_v59 = vsel %vm311_vm1, %v318_v55, 0.0  ;;  %v342_v60 = vperm.slane %v338_v56, 0 }
  0x47   : > { %v362_v61 = vperm.slane %v1447_v54, 0  ;;  %v388_v62 = vperm.slane %v1445_v53, 1  ;;  %v389_v63 = vperm.slane %v1445_v53, 3  ;;  %v403_v0 = vperm.slane %v1411_v11, 3 }
  0x48   : > { %v295_v1 = vperm.slane %v291_v57, 0  ;;  %v344_v2 = vsel %vm333_vm4, %v342_v60, 0.0  ;;  %v346_v3 = vsel %vm335_vm5, %v342_v60, 0.0  ;;  %v404_v4 = vperm.slane %v402_v46, 1 }
  0x49   : > { %v366_v5 = vperm.slane %v362_v61, 0  ;;  %v392_v6 = vperm.slane %v388_v62, 1  ;;  %v393_v7 = vperm.slane %v389_v63, 1  ;;  %v405_v9 = vperm.slane %v403_v0, 1 }
  0x4a   : > { %v297_v10 = vsel %vm286_vm2, %v295_v1, 0.0  ;;  %v299_v13 = vsel %vm288_vm3, %v295_v1, 0.0  ;;  %vm406_vm12 = vcmp.eq.s32.totalorder %v1409_v8, %v404_v4  ;;  %vm408_vm13 = vcmp.eq.s32.totalorder %v1414_v12, %v404_v4 }
  0x4b   : > { %v324_v14 = vadd.f32 %v320_v58, %v297_v10  ;;  %v326_v15 = vadd.f32 %v322_v59, %v299_v13  ;;  %v368_v16 = vsel %vm357_vm6, %v366_v5, 0.0  ;;  %v370_v18 = vsel %vm359_vm7, %v366_v5, 0.0 }
  0x4c   : > { %v394_v21 = vsel %vm384_vm8, %v392_v6, 0.0  ;;  %v395_v22 = vsel %vm385_vm9, %v393_v7, 0.0  ;;  %v396_v23 = vsel %vm386_vm10, %v392_v6, 0.0  ;;  %v397_v24 = vsel %vm387_vm11, %v393_v7, 0.0 }
  0x4d   : > { %v348_v25 = vadd.f32 %v344_v2, %v324_v14  ;;  %v350_v26 = vadd.f32 %v346_v3, %v326_v15  ;;  %vm407_vm14 = vcmp.eq.s32.totalorder %v1409_v8, %v405_v9  ;;  %vm409_vm15 = vcmp.eq.s32.totalorder %v1414_v12, %v405_v9 }
  0x4e   : > { %v410_v27 = vperm.slane %v1435_v40, 1  ;;  %v411_v28 = vperm.slane %v1435_v40, 3  ;;  %v424_v29 = vperm.slane %v1421_v19, 1  ;;  %v425_v30 = vperm.slane %v1421_v19, 3 }
  0x4f   : > { %v372_v31 = vadd.f32 %v368_v16, %v348_v25  ;;  %v374_v32 = vadd.f32 %v370_v18, %v350_v26  ;;  %v432_v33 = vperm.slane %v1440_v48, 1  ;;  %v433_v34 = vperm.slane %v1440_v48, 3  ;;  %v1054_v26 = vld [vmem:[%s1403_s8] sm:$0xff] }
  0x50   : > { %v414_v35 = vperm.slane %v410_v27, 1  ;;  %v415_v36 = vperm.slane %v411_v28, 1  ;;  %v426_v37 = vperm.slane %v424_v29, 1  ;;  %v427_v38 = vperm.slane %v425_v30, 1  ;;  %v1058_v27 = vld [vmem:[%s1403_s8 + $0x20] sm:$0xff] }
  0x51   : > { %v436_v39 = vperm.slane %v432_v33, 1  ;;  %v437_v41 = vperm.slane %v433_v34, 1  ;;  %v446_v42 = vperm.slane %v1424_v20, 1  ;;  %v447_v43 = vperm.slane %v1424_v20, 3 }
  0x52   : > { %v416_v44 = vsel %vm406_vm12, %v414_v35, 0.0  ;;  %v417_v45 = vsel %vm407_vm14, %v415_v36, 0.0  ;;  %v418_v46 = vsel %vm408_vm13, %v414_v35, 0.0  ;;  %v419_v47 = vsel %vm409_vm15, %v415_v36, 0.0 }
  0x53   : > { %v420_v49 = vadd.f32 %v416_v44, %v394_v21  ;;  %v421_v50 = vadd.f32 %v417_v45, %v395_v22  ;;  %v422_v51 = vadd.f32 %v418_v46, %v396_v23  ;;  %v423_v52 = vadd.f32 %v419_v47, %v397_v24  ;;  %v1055_v46 = vld [vmem:[%s1403_s8 + $0x8] sm:$0xff] }
  0x54   : > { %vm428_vm0 = vcmp.eq.s32.totalorder %v1409_v8, %v426_v37  ;;  %vm429_vm1 = vcmp.eq.s32.totalorder %v1409_v8, %v427_v38  ;;  %vm430_vm2 = vcmp.eq.s32.totalorder %v1414_v12, %v426_v37  ;;  %vm431_vm3 = vcmp.eq.s32.totalorder %v1414_v12, %v427_v38  ;;  %v1059_v47 = vld [vmem:[%s1403_s8 + $0x28] sm:$0xff] }
  0x55   : > { %v438_v55 = vsel %vm428_vm0, %v436_v39, 0.0  ;;  %v439_v56 = vsel %vm429_vm1, %v437_v41, 0.0  ;;  %v440_v57 = vsel %vm430_vm2, %v436_v39, 0.0  ;;  %v441_v58 = vsel %vm431_vm3, %v437_v41, 0.0 }
  0x56   : > { %v442_v59 = vadd.f32 %v438_v55, %v420_v49  ;;  %v443_v60 = vadd.f32 %v439_v56, %v421_v50  ;;  %v444_v61 = vadd.f32 %v440_v57, %v422_v51  ;;  %v445_v62 = vadd.f32 %v441_v58, %v423_v52  ;;  %v1057_v49 = vld [vmem:[%s1403_s8 + $0x18] sm:$0xff] }
  0x57   : > { %v448_v63 = vperm.slane %v446_v42, 1  ;;  %v449_v0 = vperm.slane %v447_v43, 1  ;;  %v454_v1 = vperm.slane %v1447_v54, 1  ;;  %v455_v2 = vperm.slane %v1447_v54, 3  ;;  %v1061_v50 = vld [vmem:[%s1403_s8 + $0x38] sm:$0xff] }
  0x58   : > { %v484_v3 = vpack.c.bf16 %v374_v32, %v372_v31  ;;  %v283_v4 = vperm.slane %v1417_v17, 2  ;;  %v292_v5 = vperm.slane %v1445_v53, 2  ;;  %v306_v6 = vperm.slane %v1411_v11, 2 }
  0x59   : > { %vm450_vm4 = vcmp.eq.s32.totalorder %v1409_v8, %v448_v63  ;;  %vm451_vm5 = vcmp.eq.s32.totalorder %v1409_v8, %v449_v0  ;;  %vm452_vm6 = vcmp.eq.s32.totalorder %v1414_v12, %v448_v63  ;;  %vm453_vm7 = vcmp.eq.s32.totalorder %v1414_v12, %v449_v0 }
  0x5a   : > { %v458_v7 = vperm.slane %v454_v1, 1  ;;  %v459_v9 = vperm.slane %v455_v2, 1  ;;  %558 = vmatpush.bf16.msra.mxu0 %v484_v3  ;;  %1063 = vmatpush.bf16.msra.mxu2 %v484_v3  ;;  %v285_v10 = vperm.slane %v283_v4, 0  ;;  %v296_v17 = vperm.slane %v292_v5, 0 }
  0x5b   : > { %v308_v13 = vperm.slane %v306_v6, 0  ;;  %v315_v53 = vperm.slane %v1435_v40, 2  ;;  %v330_v11 = vperm.slane %v1421_v19, 2  ;;  %v339_v14 = vperm.slane %v1440_v48, 2 }
  0x5c   : > { %v460_v15 = vsel %vm450_vm4, %v458_v7, 0.0  ;;  %v461_v16 = vsel %vm451_vm5, %v459_v9, 0.0  ;;  %v462_v18 = vsel %vm452_vm6, %v458_v7, 0.0  ;;  %v463_v21 = vsel %vm453_vm7, %v459_v9, 0.0 }
  0x5d   : > { %v1519_v22 = vadd.f32 %v460_v15, %v442_v59  ;;  %v1521_v23 = vadd.f32 %v461_v16, %v443_v60  ;;  %v1523_v24 = vadd.f32 %v462_v18, %v444_v61  ;;  %v1525_v25 = vadd.f32 %v463_v21, %v445_v62 }
  0x5e   : > { %vm287_vm8 = vcmp.eq.s32.totalorder %v1409_v8, %v285_v10  ;;  %vm289_vm9 = vcmp.eq.s32.totalorder %v1414_v12, %v285_v10  ;;  %vm310_vm10 = vcmp.eq.s32.totalorder %v1409_v8, %v308_v13  ;;  %vm312_vm11 = vcmp.eq.s32.totalorder %v1414_v12, %v308_v13 }
  0x5f   : > { %v298_v19 = vsel %vm287_vm8, %v296_v17, 0.0  ;;  %v300_v40 = vsel %vm289_vm9, %v296_v17, 0.0  ;;  %v319_v48 = vperm.slane %v315_v53, 0  ;;  %v332_v28 = vperm.slane %v330_v11, 0 }
  0x60   : > { %v343_v29 = vperm.slane %v339_v14, 0  ;;  %v354_v30 = vperm.slane %v1424_v20, 2  ;;  %v363_v31 = vperm.slane %v1447_v54, 2  ;;  %vm526_vm12 = vcmask 130048  }
  0x61   : > { %v321_v32 = vsel %vm310_vm10, %v319_v48, 0.0  ;;  %v323_v33 = vsel %vm312_vm11, %v319_v48, 0.0  ;;  %vm334_vm13 = vcmp.eq.s32.totalorder %v1409_v8, %v332_v28  ;;  %vm336_vm14 = vcmp.eq.s32.totalorder %v1414_v12, %v332_v28  ;;  %1031 = vmatmul.msk.bf16.vlgmr.msra.gmra.mxu0 %vm526_vm12, %v1054_v26  ;;  %1035 = vmatmul.msk.bf16.vlgmr.msra.gmra.mxu2 %vm526_vm12, %v1058_v27 }
  0x62   : > { %v325_v34 = vadd.f32 %v321_v32, %v298_v19  ;;  %v327_v35 = vadd.f32 %v323_v33, %v300_v40  ;;  %v345_v36 = vsel %vm334_vm13, %v343_v29, 0.0  ;;  %v347_v37 = vsel %vm336_vm14, %v343_v29, 0.0 }
  0x63   : > { %v356_v20 = vperm.slane %v354_v30, 0  ;;  %v367_v38 = vperm.slane %v363_v31, 0  ;;  %vm811_vm1 = vcmask 1041409   ;;  %vm813_vm2 = vcmask 1042434  }
  0x64   : > { %v349_v54 = vadd.f32 %v345_v36, %v325_v34  ;;  %v351_v39 = vadd.f32 %v347_v37, %v327_v35  ;;  %vm815_vm3 = vcmask 1043459   ;;  %vm817_vm4 = vcmask 1044484  }
  0x65   : > { %vm358_vm15 = vcmp.eq.s32.totalorder %v1409_v8, %v356_v20  ;;  %vm360_vm0 = vcmp.eq.s32.totalorder %v1414_v12, %v356_v20  ;;  %v1056_v8 = vld [vmem:[%s1403_s8 + $0x10] sm:$0xff]  ;;  %vm819_vm5 = vcmask 1045509   ;;  %vm821_vm6 = vcmask 1046534  }
  0x66   : > { %v369_v41 = vsel %vm358_vm15, %v367_v38, 0.0  ;;  %v371_v42 = vsel %vm360_vm0, %v367_v38, 0.0  ;;  %v1060_v12 = vld [vmem:[%s1403_s8 + $0x30] sm:$0xff]  ;;  %vm823_vm7 = vcmask 1047559  }
  0x67   : > { %v373_v43 = vadd.f32 %v369_v41, %v349_v54  ;;  %v375_v44 = vadd.f32 %v371_v42, %v351_v39 }
  0x69   : > { %v485_v45 = vpack.c.bf16 %v375_v44, %v373_v43 }
  0x6b   : > { %607 = vmatpush.bf16.msra.mxu1 %v485_v45  ;;  %1064 = vmatpush.bf16.msra.mxu3 %v485_v45 }
  0x6e   : > { %1039 = vmatmul.msk.bf16.vlgmr.msra.gmra.mxu1 %vm526_vm12, %v1054_v26  ;;  %1043 = vmatmul.msk.bf16.vlgmr.msra.gmra.mxu3 %vm526_vm12, %v1058_v27 }
  0x71   : > { %1032 = vmatmul.msk.bf16.gmra.mxu0 %vm526_vm12, %v1055_v46  ;;  %1036 = vmatmul.msk.bf16.gmra.mxu2 %vm526_vm12, %v1059_v47 }
  0x7e   : > { %1040 = vmatmul.msk.bf16.gmra.mxu1 %vm526_vm12, %v1055_v46  ;;  %1044 = vmatmul.msk.bf16.gmra.mxu3 %vm526_vm12, %v1059_v47 }
  0x81   : > { %1033 = vmatmul.msk.bf16.gmra.mxu0 %vm526_vm12, %v1056_v8  ;;  %1037 = vmatmul.msk.bf16.gmra.mxu2 %vm526_vm12, %v1060_v12 }
  0x8e   : > { %1041 = vmatmul.msk.bf16.gmra.mxu1 %vm526_vm12, %v1056_v8  ;;  %1045 = vmatmul.msk.bf16.gmra.mxu3 %vm526_vm12, %v1060_v12 }
  0x91   : > { %1034 = vmatmul.msk.bf16.gmra.mxu0 %vm526_vm12, %v1057_v49  ;;  %1038 = vmatmul.msk.bf16.gmra.mxu2 %vm526_vm12, %v1061_v50 }
  0x9e   : > { %1042 = vmatmul.msk.bf16.gmra.mxu1 %vm526_vm12, %v1057_v49  ;;  %1046 = vmatmul.msk.bf16.gmra.mxu3 %vm526_vm12, %v1061_v50 }
  0xde   : > { %v560_v51 = vpop.f32.mrf.mxu0 }
  0xdf   : > { %v651_v56 = vmul.f32 %v560_v51, %v1519_v22 }
  0xe4   : > { %v580_v52 = vpop.f32.mrf.mxu2 }
  0xe5   : > { %v667_v61 = vmul.f32 %v580_v52, %v1519_v22 }
  0xe6   : > { %v562_v55 = vpop.f32.mrf.mxu0 }
  0xe7   : > { %v653_v57 = vmul.f32 %v562_v55, %v1523_v24 }
  0xe9   : > { %v683_v58 = vadd.f32 %v653_v57, %v651_v56 }
  0xeb   : > { %v609_v59 = vpop.f32.mrf.mxu1  ;;  %v684_v2 = vrot.slane %v683_v58, 4 }
  0xec   : > { %v582_v60 = vpop.f32.mrf.mxu2  ;;  %v652_v4 = vmul.f32 %v609_v59, %v1521_v23 }
  0xed   : > { %v669_v62 = vmul.f32 %v582_v60, %v1523_v24  ;;  %v685_v7 = vadd.f32 %v684_v2, %v683_v58 }
  0xee   : > { %v565_v63 = vpop.f32.mrf.mxu0 }
  0xef   : > { %v1565_v0 = vadd.f32 %v669_v62, %v667_v61  ;;  %v655_v17 = vmul.f32 %v565_v63, %v1519_v22  ;;  %v686_v53 = vrot.slane %v685_v7, 2 }
  0xf1   : > { %v629_v1 = vpop.f32.mrf.mxu3  ;;  %v687_v19 = vadd.f32 %v686_v53, %v685_v7 }
  0xf2   : > { %v668_v15 = vmul.f32 %v629_v1, %v1521_v23 }
  0xf3   : > { %v611_v3 = vpop.f32.mrf.mxu1  ;;  %v688_v33 = vrot.slane %v687_v19, 1 }
  0xf4   : > { %v654_v5 = vmul.f32 %v611_v3, %v1525_v25  ;;  %v585_v6 = vpop.f32.mrf.mxu2 }
  0xf5   : > { %v671_v40 = vmul.f32 %v585_v6, %v1519_v22  ;;  %v689_v41 = vadd.f32 %v688_v33, %v687_v19 }
  0xf6   : > { %v690_v9 = vadd.f32 %v654_v5, %v652_v4  ;;  %v567_v10 = vpop.f32.mrf.mxu0 }
  0xf7   : > { %v657_v13 = vmul.f32 %v567_v10, %v1523_v24 }
  0xf8   : > { %v691_v29 = vrot.slane %v690_v9, 4 }
  0xf9   : > { %v631_v11 = vpop.f32.mrf.mxu3  ;;  %v697_v14 = vadd.f32 %v657_v13, %v655_v17  ;;  %v740_v13 = vrot.slane %v1565_v0, 4 }
  0xfa   : > { %v670_v16 = vmul.f32 %v631_v11, %v1525_v25  ;;  %v692_v36 = vadd.f32 %v691_v29, %v690_v9 }
  0xfb   : > { %v614_v18 = vpop.f32.mrf.mxu1  ;;  %v698_v21 = vrot.slane %v697_v14, 4 }
  0xfc   : > { %v1573_v26 = vadd.f32 %v670_v16, %v668_v15  ;;  %v587_v27 = vpop.f32.mrf.mxu2  ;;  %v656_v38 = vmul.f32 %v614_v18, %v1521_v23  ;;  %v693_v43 = vrot.slane %v692_v36, 2 }
  0xfd   : > { %v699_v48 = vadd.f32 %v698_v21, %v697_v14  ;;  %v673_v28 = vmul.f32 %v587_v27, %v1523_v24 }
  0xfe   : > { %v570_v30 = vpop.f32.mrf.mxu0  ;;  %v694_v51 = vadd.f32 %v693_v43, %v692_v36 }
  0xff   : > { %v700_v31 = vrot.slane %v699_v48, 2  ;;  %v753_v32 = vadd.f32 %v673_v28, %v671_v40  ;;  %v659_v47 = vmul.f32 %v570_v30, %v1519_v22 }
 0x100   : > { %v695_v2 = vrot.slane %v694_v51, 1 }
 0x101   : > { %v634_v34 = vpop.f32.mrf.mxu3  ;;  %v701_v35 = vadd.f32 %v700_v31, %v699_v48  ;;  %v754_v11 = vrot.slane %v753_v32, 4  ;;  %v741_v48 = vadd.f32 %v740_v13, %v1565_v0 }
 0x102   : > { %v672_v52 = vmul.f32 %v634_v34, %v1521_v23  ;;  %v696_v17 = vadd.f32 %v695_v2, %v694_v51 }
 0x103   : > { %v702_v37 = vrot.slane %v701_v35, 1  ;;  %v616_v20 = vpop.f32.mrf.mxu1  ;;  %v755_v30 = vadd.f32 %v754_v11, %v753_v32 }
 0x104   : > { %v658_v54 = vmul.f32 %v616_v20, %v1525_v25  ;;  %v590_v39 = vpop.f32.mrf.mxu2 }
 0x105   : > { %v703_v42 = vadd.f32 %v702_v37, %v701_v35  ;;  %v675_v62 = vmul.f32 %v590_v39, %v1519_v22  ;;  %v756_v0 = vrot.slane %v755_v30, 2 }
 0x106   : > { %v704_v44 = vadd.f32 %v658_v54, %v656_v38  ;;  %v572_v45 = vpop.f32.mrf.mxu0  ;;  %v742_v38 = vrot.slane %v741_v48, 2 }
 0x107   : > { %v812_v46 = vsel %vm811_vm1, %v703_v42, %v689_v41  ;;  %v661_v8 = vmul.f32 %v572_v45, %v1523_v24 }
 0x108   : > { %v705_v12 = vrot.slane %v704_v44, 4 }
 0x109   : > { %v636_v49 = vpop.f32.mrf.mxu3  ;;  %v711_v50 = vadd.f32 %v661_v8, %v659_v47 }
 0x10a   : > { %v706_v55 = vadd.f32 %v705_v12, %v704_v44  ;;  %v674_v56 = vmul.f32 %v636_v49, %v1525_v25  ;;  %v743_v49 = vadd.f32 %v742_v38, %v741_v48 }
 0x10b   : > { %v619_v57 = vpop.f32.mrf.mxu1  ;;  %v712_v58 = vrot.slane %v711_v50, 4 }
 0x10c   : > { %v707_v59 = vrot.slane %v706_v55, 2  ;;  %v1584_v60 = vadd.f32 %v674_v56, %v672_v52  ;;  %v592_v61 = vpop.f32.mrf.mxu2  ;;  %v660_v18 = vmul.f32 %v619_v57, %v1521_v23  ;;  %v757_v52 = vadd.f32 %v756_v0, %v755_v30 }
 0x10d   : > { %v713_v63 = vadd.f32 %v712_v58, %v711_v50  ;;  %v677_v1 = vmul.f32 %v592_v61, %v1523_v24  ;;  %v747_v50 = vrot.slane %v1573_v26, 4  ;;  %v744_v2 = vrot.slane %v743_v49, 1 }
 0x10e   : > { %v708_v3 = vadd.f32 %v707_v59, %v706_v55  ;;  %v575_v4 = vpop.f32.mrf.mxu0  ;;  %v761_v55 = vrot.slane %v1584_v60, 4 }
 0x10f   : > { %v714_v5 = vrot.slane %v713_v63, 2  ;;  %v767_v6 = vadd.f32 %v677_v1, %v675_v62  ;;  %v663_v33 = vmul.f32 %v575_v4, %v1519_v22 }
 0x110   : > { %v709_v7 = vrot.slane %v708_v3, 1  ;;  %v762_v4 = vadd.f32 %v761_v55, %v1584_v60 }
 0x111   : > { %v639_v9 = vpop.f32.mrf.mxu3  ;;  %v715_v10 = vadd.f32 %v714_v5, %v713_v63  ;;  %v768_v27 = vrot.slane %v767_v6, 4 }
 0x112   : > { %v710_v53 = vadd.f32 %v709_v7, %v708_v3  ;;  %v676_v54 = vmul.f32 %v639_v9, %v1521_v23 }
 0x113   : > { %v716_v14 = vrot.slane %v715_v10, 1  ;;  %v621_v15 = vpop.f32.mrf.mxu1  ;;  %v769_v36 = vadd.f32 %v768_v27, %v767_v6 }
 0x114   : > { %v825_v16 = vsel %vm811_vm1, %v710_v53, %v696_v17  ;;  %v662_v21 = vmul.f32 %v621_v15, %v1525_v25  ;;  %v595_v19 = vpop.f32.mrf.mxu2 }
 0x115   : > { %v717_v40 = vadd.f32 %v716_v14, %v715_v10  ;;  %v770_v44 = vrot.slane %v769_v36, 2  ;;  %v679_v47 = vmul.f32 %v595_v19, %v1519_v22  ;;  %v748_v22 = vadd.f32 %v747_v50, %v1573_v26 }
 0x116   : > { %v718_v28 = vadd.f32 %v662_v21, %v660_v18  ;;  %v577_v29 = vpop.f32.mrf.mxu0  ;;  %v745_v14 = vadd.f32 %v744_v2, %v743_v49 }
 0x117   : > { %v814_v31 = vsel %vm813_vm2, %v717_v40, %v812_v46  ;;  %v665_v34 = vmul.f32 %v577_v29, %v1523_v24  ;;  %v771_v59 = vadd.f32 %v770_v44, %v769_v36  ;;  %v749_v15 = vrot.slane %v748_v22, 2 }
 0x118   : > { %v719_v35 = vrot.slane %v718_v28, 4 }
 0x119   : > { %v641_v37 = vpop.f32.mrf.mxu3  ;;  %v725_v20 = vadd.f32 %v665_v34, %v663_v33  ;;  %v772_v10 = vrot.slane %v771_v59, 1 }
 0x11a   : > { %v720_v39 = vadd.f32 %v719_v35, %v718_v28  ;;  %v678_v41 = vmul.f32 %v641_v37, %v1525_v25  ;;  %v750_v37 = vadd.f32 %v749_v15, %v748_v22 }
 0x11b   : > { %v624_v42 = vpop.f32.mrf.mxu1  ;;  %v726_v43 = vrot.slane %v725_v20, 4  ;;  %v773_v19 = vadd.f32 %v772_v10, %v771_v59 }
 0x11c   : > { %v721_v32 = vrot.slane %v720_v39, 2  ;;  %v774_v45 = vadd.f32 %v678_v41, %v676_v54  ;;  %v597_v46 = vpop.f32.mrf.mxu2  ;;  %v664_v17 = vmul.f32 %v624_v42, %v1521_v23 }
 0x11d   : > { %v727_v8 = vadd.f32 %v726_v43, %v725_v20  ;;  %v681_v12 = vmul.f32 %v597_v46, %v1523_v24  ;;  %v758_v24 = vrot.slane %v757_v52, 1 }
 0x11e   : > { %v722_v51 = vadd.f32 %v721_v32, %v720_v39  ;;  %v775_v61 = vrot.slane %v774_v45, 4  ;;  %v751_v32 = vrot.slane %v750_v37, 1 }
 0x11f   : > { %v728_v56 = vrot.slane %v727_v8, 2  ;;  %v781_v57 = vadd.f32 %v681_v12, %v679_v47  ;;  %v759_v60 = vadd.f32 %v758_v24, %v757_v52 }
 0x120   : > { %v723_v58 = vrot.slane %v722_v51, 1  ;;  %v776_v53 = vadd.f32 %v775_v61, %v774_v45 }
 0x121   : > { %v644_v62 = vpop.f32.mrf.mxu3  ;;  %v729_v63 = vadd.f32 %v728_v56, %v727_v8  ;;  %v782_v1 = vrot.slane %v781_v57, 4  ;;  %v752_v8 = vadd.f32 %v751_v32, %v750_v37 }
 0x122   : > { %v724_v3 = vadd.f32 %v723_v58, %v722_v51  ;;  %v777_v28 = vrot.slane %v776_v53, 2  ;;  %v680_v34 = vmul.f32 %v644_v62, %v1521_v23 }
 0x123   : > { %v730_v5 = vrot.slane %v729_v63, 1  ;;  %v626_v6 = vpop.f32.mrf.mxu1  ;;  %v783_v7 = vadd.f32 %v782_v1, %v781_v57 }
 0x124   : > { %v826_v9 = vsel %vm813_vm2, %v724_v3, %v825_v16  ;;  %v666_v13 = vmul.f32 %v626_v6, %v1525_v25  ;;  %v763_v16 = vrot.slane %v762_v4, 2  ;;  %v778_v41 = vadd.f32 %v777_v28, %v776_v53 }
 0x125   : > { %v731_v11 = vadd.f32 %v730_v5, %v729_v63  ;;  %v784_v26 = vrot.slane %v783_v7, 2 }
 0x126   : > { %v732_v18 = vadd.f32 %v666_v13, %v664_v17  ;;  %v764_v38 = vadd.f32 %v763_v16, %v762_v4 }
 0x127   : > { %v816_v21 = vsel %vm815_vm3, %v731_v11, %v814_v31  ;;  %v785_v27 = vadd.f32 %v784_v26, %v783_v7 }
 0x128   : > { %v818_v40 = vsel %vm817_vm4, %v745_v14, %v816_v21  ;;  %v733_v48 = vrot.slane %v732_v18, 4  ;;  %v765_v23 = vrot.slane %v764_v38, 1 }
 0x129   : > { %v786_v29 = vrot.slane %v785_v27, 1  ;;  %v646_v30 = vpop.f32.mrf.mxu3  ;;  %v820_v33 = vsel %vm819_vm5, %v759_v60, %v818_v40 }
 0x12a   : > { %v734_v35 = vadd.f32 %v733_v48, %v732_v18  ;;  %v682_v36 = vmul.f32 %v646_v30, %v1525_v25  ;;  %v822_v31 = vsel %vm821_vm6, %v773_v19, %v820_v33  ;;  %v779_v25 = vrot.slane %v778_v41, 1 }
 0x12b   : > { %v787_v20 = vadd.f32 %v786_v29, %v785_v27  ;;  %v766_v12 = vadd.f32 %v765_v23, %v764_v38 }
 0x12c   : > { %v735_v54 = vrot.slane %v734_v35, 2  ;;  %v788_v39 = vadd.f32 %v682_v36, %v680_v34  ;;  %v780_v51 = vadd.f32 %v779_v25, %v778_v41 }
 0x12d   : > { %v824_v0 = vsel %vm823_vm7, %v787_v20, %v822_v31 }
 0x12e   : > { %v736_v42 = vadd.f32 %v735_v54, %v734_v35  ;;  %v789_v43 = vrot.slane %v788_v39, 4  ;;  %843 = vst [vmem:[%s232_s15] sm:$0xff] %v824_v0 }
 0x130   : > { %v737_v44 = vrot.slane %v736_v42, 1  ;;  %v790_v45 = vadd.f32 %v789_v43, %v788_v39 }
 0x132   : > { %v738_v46 = vadd.f32 %v737_v44, %v736_v42  ;;  %v791_v47 = vrot.slane %v790_v45, 2 }
 0x134   : > { %v827_v49 = vsel %vm815_vm3, %v738_v46, %v826_v9  ;;  %v792_v50 = vadd.f32 %v791_v47, %v790_v45 }
 0x135   : > { %v828_v52 = vsel %vm817_vm4, %v752_v8, %v827_v49 }
 0x136   : > { %v793_v55 = vrot.slane %v792_v50, 1  ;;  %v829_v56 = vsel %vm819_vm5, %v766_v12, %v828_v52 }
 0x137   : > { %v830_v57 = vsel %vm821_vm6, %v780_v51, %v829_v56 }
 0x138   : > { %v794_v58 = vadd.f32 %v793_v55, %v792_v50 }
 0x13a   : > { %v831_v59 = vsel %vm823_vm7, %v794_v58, %v830_v57 }
 0x13b   : > { %844 = vst [vmem:[%s232_s15 + $0x8] sm:$0xff] %v831_v59 }
 0x13c   : > { %1223 = shalt.err (!%p1220_p13)
}
 0x13d   : > { %1071 = dma.vmem_to_hbm [thread:$0]  (%p1352_p9), %s862_s12, 256, %s864_s19, %s846_s27  }
 0x13e PF: > { %s875_s3 = sand.u32 1, %s1262_s9   ;;  %p1081_p0 = pnand %p980_p12, %p1359_p11 }
 0x13f   : > { %s876_s6 = scalar_lea.sflag [#allocation5], %s875_s3 }
 0x140   : > { %p1082_p1 = pneg %p1081_p0 }
 0x142   : > { %1257 = dma.done.wait (%p1082_p1), %s876_s6, 256  }
 0x143   : > { %1259 = vsyncadd (%p1082_p1), %s876_s6, 4294967040  ;;  %s21_s14 = sadd.s32 1, %s1282_s14   ;;  %s1666_s9 = smov %s1266_s10 }
 0x144   : > { %p18_p2 = scmp.ge.s32.totalorder %s21_s14, 4   ;;  %s1667_s10 = smov %s1270_s11 }
 0x145   : > { %s1668_s11 = smov %s1357_s23  ;;  %s1669_s12 = smov %s1278_s13 }
 0x146   : > { %s1670_s13 = smov %s1672_s17  ;;  %20 = sbr.rel (!%p18_p2) target bundleno = 8 (0x8), region = 94 }
 0x14b   :  { %882 = vsyncpa [#allocation4], 1 }
 0x14c   :  { %884 = vsyncpa [#allocation4 + $0x1], 1 }
 0x14d   :  { %885 = vsyncpa [#allocation7], 1 }
 0x14e   :  { %887 = vsyncpa [#allocation7 + $0x1], 1 }
 0x14f   :  { %888 = vsyncpa [#allocation5], 1 }
 0x150   :  { %890 = vsyncpa [#allocation5 + $0x1], 1 }

</bundles_post_ra>
